<compile_context>
chip_gen: v5e
topology: v5e:2x2
jax: 0.10.0
libtpu: 0.0.40
codegen_flags: <defaults>
</compile_context>

<pallas_src>
import functools
import math

import jax
import jax.numpy as jnp
from jax import lax
from jax.experimental import pallas as pl
from jax.experimental.pallas import tpu as pltpu


def _round_up(v, m):
    return (v + m - 1) // m * m


def _pick_tile(dim, pref):
    """Return (tile, padded_dim).

    If the dim fits in one preferred tile, use the full dim as the block size
    (allowed: block == full array dim), so no padding copy is needed.
    Otherwise use the preferred tile (multiple of 8/128) and pad up if ragged.
    """
    if dim <= pref:
        return dim, dim
    return pref, _round_up(dim, pref)


def _maybe_pad2d(a, rows, cols):
    r, c = a.shape
    if r == rows and c == cols:
        return a
    return jnp.pad(a, ((0, rows - r), (0, cols - c)))


def _vmem_limit(nbytes):
    # Raise scoped VMEM above the working set, but never past a v7x-safe cap.
    return int(min(max(int(nbytes * 1.25), 32 * 2**20), 56 * 2**20))


# --------------------------------------------------------------------------
# Kernels
# --------------------------------------------------------------------------

def _sample_weights_kernel(mu_ref, rho_ref, eps_ref, w_ref):
    # sigma = softplus(rho) + 1e-5 ; W = mu + eps * sigma  (done once per block)
    sigma = jax.nn.softplus(rho_ref[...]) + 1e-5
    w_ref[...] = mu_ref[...] + eps_ref[...] * sigma


def _fused_kernel(x_ref, mu_ref, rho_ref, eps_ref, bias_ref, o_ref):
    # Single-pass path: sample weights in-flight and accumulate directly into
    # the k-resident f32 output tile (no separate accumulator scratch).
    k = pl.program_id(2)

    @pl.when(k == 0)
    def _():
        o_ref[...] = jnp.broadcast_to(bias_ref[...], o_ref.shape)

    sigma = jax.nn.softplus(rho_ref[...]) + 1e-5
    w = mu_ref[...] + eps_ref[...] * sigma                    # [tn, tk]

    # y_tile += x_tile @ w.T expressed as an NT contraction (no XLU transpose).
    o_ref[...] += lax.dot_general(
        x_ref[...], w,
        dimension_numbers=(((1,), (1,)), ((), ())),
        preferred_element_type=jnp.float32)


def _linear_kernel(x_ref, w_ref, bias_ref, o_ref):
    # Plain x @ W^T + bias, streaming pre-sampled weights only.
    k = pl.program_id(2)

    @pl.when(k == 0)
    def _():
        o_ref[...] = jnp.broadcast_to(bias_ref[...], o_ref.shape)

    o_ref[...] += lax.dot_general(
        x_ref[...], w_ref[...],
        dimension_numbers=(((1,), (1,)), ((), ())),
        preferred_element_type=jnp.float32)


# --------------------------------------------------------------------------
# pallas_call wrappers
# --------------------------------------------------------------------------

def _sample_weights(mu, rho, eps, tn, tk, Np, Kp):
    tile_bytes = 4 * tn * tk
    # 3 double-buffered inputs + 1 double-buffered output.
    vmem = 2 * (3 * tile_bytes) + 2 * tile_bytes
    return pl.pallas_call(
        _sample_weights_kernel,
        out_shape=jax.ShapeDtypeStruct((Np, Kp), jnp.float32),
        grid_spec=pltpu.PrefetchScalarGridSpec(
            num_scalar_prefetch=0,
            grid=(Np // tn, Kp // tk),
            in_specs=[pl.BlockSpec((tn, tk), lambda j, k: (j, k))] * 3,
            out_specs=pl.BlockSpec((tn, tk), lambda j, k: (j, k)),
        ),
        compiler_params=pltpu.CompilerParams(
            dimension_semantics=("parallel", "parallel"),
            vmem_limit_bytes=_vmem_limit(vmem)),
    )(mu, rho, eps)


def _fused_forward(x, mu, rho, eps, bias2d, tm, tn, tk, Bp, Np, Kp):
    in_bytes = 4 * (tm * tk + 3 * tn * tk + tn)
    out_bytes = 4 * tm * tn
    return pl.pallas_call(
        _fused_kernel,
        out_shape=jax.ShapeDtypeStruct((Bp, Np), jnp.float32),
        grid_spec=pltpu.PrefetchScalarGridSpec(
            num_scalar_prefetch=0,
            grid=(Bp // tm, Np // tn, Kp // tk),
            in_specs=[
                pl.BlockSpec((tm, tk), lambda i, j, k: (i, k)),   # x
                pl.BlockSpec((tn, tk), lambda i, j, k: (j, k)),   # mu
                pl.BlockSpec((tn, tk), lambda i, j, k: (j, k)),   # rho
                pl.BlockSpec((tn, tk), lambda i, j, k: (j, k)),   # eps
                pl.BlockSpec((1, tn), lambda i, j, k: (0, j)),    # bias
            ],
            out_specs=pl.BlockSpec((tm, tn), lambda i, j, k: (i, j)),
        ),
        compiler_params=pltpu.CompilerParams(
            dimension_semantics=("parallel", "parallel", "arbitrary"),
            vmem_limit_bytes=_vmem_limit(2 * (in_bytes + out_bytes))),
    )(x, mu, rho, eps, bias2d)


def _linear_forward(x, w, bias2d, tm, tn, tk, Bp, Np, Kp):
    in_bytes = 4 * (tm * tk + tn * tk + tn)
    out_bytes = 4 * tm * tn
    return pl.pallas_call(
        _linear_kernel,
        out_shape=jax.ShapeDtypeStruct((Bp, Np), jnp.float32),
        grid_spec=pltpu.PrefetchScalarGridSpec(
            num_scalar_prefetch=0,
            grid=(Bp // tm, Np // tn, Kp // tk),
            in_specs=[
                pl.BlockSpec((tm, tk), lambda i, j, k: (i, k)),   # x
                pl.BlockSpec((tn, tk), lambda i, j, k: (j, k)),   # W
                pl.BlockSpec((1, tn), lambda i, j, k: (0, j)),    # bias
            ],
            out_specs=pl.BlockSpec((tm, tn), lambda i, j, k: (i, j)),
        ),
        compiler_params=pltpu.CompilerParams(
            dimension_semantics=("parallel", "parallel", "arbitrary"),
            vmem_limit_bytes=_vmem_limit(2 * (in_bytes + out_bytes))),
    )(x, w, bias2d)


@functools.partial(jax.jit, static_argnames=("tm", "tn", "tk"))
def bayes_linear(x, mu, rho, eps, bias, *, tm=1024, tn=512, tk=512):
    """y = x @ (mu + eps * (softplus(rho) + 1e-5)).T + bias"""
    B, in_f = x.shape
    out_f, _ = mu.shape

    x = x.astype(jnp.float32)
    mu = mu.astype(jnp.float32)
    rho = rho.astype(jnp.float32)
    eps = eps.astype(jnp.float32)
    bias = bias.astype(jnp.float32)

    tm, Bp = _pick_tile(B, tm)
    tn, Np = _pick_tile(out_f, tn)
    tk, Kp = _pick_tile(in_f, tk)

    # Pad only when a dim actually needs it (padded mu/eps are zero, so padded
    # sampled weights are exactly zero and contribute nothing).
    xp = _maybe_pad2d(x, Bp, Kp)
    mup = _maybe_pad2d(mu, Np, Kp)
    rhop = _maybe_pad2d(rho, Np, Kp)
    epsp = _maybe_pad2d(eps, Np, Kp)
    biasp = _maybe_pad2d(bias.reshape(1, out_f), 1, Np)

    if Bp // tm > 1:
        # Multiple batch tiles would re-stream mu/rho/eps per tile: sample the
        # weights once, then run a plain matmul that streams only W.
        w = _sample_weights(mup, rhop, epsp, tn, tk, Np, Kp)
        out = _linear_forward(xp, w, biasp, tm, tn, tk, Bp, Np, Kp)
    else:
        # Whole batch in one i-tile: fused single pass over mu/rho/eps.
        out = _fused_forward(xp, mup, rhop, epsp, biasp, tm, tn, tk, Bp, Np, Kp)

    if Bp != B or Np != out_f:
        out = out[:B, :out_f]
    return out


if __name__ == "__main__":
    # Small shapes consistent with the module: a linear layer 32 -> 16.
    B, in_features, out_features = 8, 32, 16
    init_scale = 0.1

    # Prior-like constants (prior.normal_init() would produce the rho bounds).
    sigma_mix = 1.0
    rho_max_init = math.log(math.exp(sigma_mix / 2.0) - 1.0)
    rho_min_init = math.log(math.exp(sigma_mix / 4.0) - 1.0)

    key = jax.random.PRNGKey(0)
    k_x, k_mu, k_rho, k_eps, k_x2 = jax.random.split(key, 5)

    x = jax.random.normal(k_x, (B, in_features), dtype=jnp.float32)
    mu = jax.random.uniform(k_mu, (out_features, in_features),
                            minval=-init_scale, maxval=init_scale,
                            dtype=jnp.float32)
    rho = jax.random.uniform(k_rho, (out_features, in_features),
                             minval=rho_min_init, maxval=rho_max_init,
                             dtype=jnp.float32)
    bias = jnp.zeros((out_features,), dtype=jnp.float32)
    # eps = randn(mean.size()) -- sampled once per forward call.
    eps = jax.random.normal(k_eps, (out_features, in_features),
                            dtype=jnp.float32)

    def ref_forward(x_, mu_, rho_, eps_, bias_):
        sigma = jax.nn.softplus(rho_) + 1e-5
        w = mu_ + eps_ * sigma
        return x_ @ w.T + bias_

    # Path 1: single batch tile -> fused kernel.
    out = jax.block_until_ready(bayes_linear(x, mu, rho, eps, bias))
    ref = ref_forward(x, mu, rho, eps, bias)
    assert out.shape == (B, out_features)
    assert jnp.allclose(out, ref, atol=1e-5, rtol=1e-5)

    # Path 2: force multiple batch tiles (tm=8) -> weights sampled once by the
    # elementwise kernel, then the W-only matmul kernel.
    B2 = 40
    x2 = jax.random.normal(k_x2, (B2, in_features), dtype=jnp.float32)
    out2 = jax.block_until_ready(bayes_linear(x2, mu, rho, eps, bias, tm=8))
    ref2 = ref_forward(x2, mu, rho, eps, bias)
    assert out2.shape == (B2, out_features)
    assert jnp.allclose(out2, ref2, atol=1e-5, rtol=1e-5)

    print("KERNEL_OK")
</pallas_src>

<mosaic_0001>
module attributes {stable_mosaic.version = 11 : i64} {
  func.func @_fused_kernel(%arg0: i32, %arg1: i32, %arg2: i32, %arg3: memref<8x32xf32, #tpu.memory_space<vmem>>, %arg4: memref<16x32xf32, #tpu.memory_space<vmem>>, %arg5: memref<16x32xf32, #tpu.memory_space<vmem>>, %arg6: memref<16x32xf32, #tpu.memory_space<vmem>>, %arg7: memref<1x16xf32, #tpu.memory_space<vmem>>, %arg8: memref<8x16xf32, #tpu.memory_space<vmem>>) attributes {dimension_semantics = [#tpu.dimension_semantics<parallel>, #tpu.dimension_semantics<parallel>, #tpu.dimension_semantics<arbitrary>], iteration_bounds = array<i64: 1, 1, 1>, scalar_prefetch = 0 : i64, scratch_operands = 0 : i64, tpu.core_type = #tpu.core_type<tc>, window_params = [{transform_indices = @transform_0, window_bounds = array<i64: 8, 32>}, {transform_indices = @transform_1, window_bounds = array<i64: 16, 32>}, {transform_indices = @transform_2, window_bounds = array<i64: 16, 32>}, {transform_indices = @transform_3, window_bounds = array<i64: 16, 32>}, {transform_indices = @transform_4, window_bounds = array<i64: 1, 16>}, {transform_indices = @transform_5, window_bounds = array<i64: 8, 16>}]} {
    %c0_i32 = arith.constant 0 : i32
    %0 = arith.cmpi eq, %arg2, %c0_i32 : i32
    %1 = arith.extui %0 : i1 to i32
    %c0_i32_0 = arith.constant 0 : i32
    %2 = arith.cmpi ne, %1, %c0_i32_0 : i32
    scf.if %2 {
      %c0_15 = arith.constant 0 : index
      %c0_16 = arith.constant 0 : index
      %29 = vector.load %arg7[%c0_15, %c0_16] : memref<1x16xf32, #tpu.memory_space<vmem>>, vector<1x16xf32>
      %30 = vector.shape_cast %29 : vector<1x16xf32> to vector<1x16xf32>
      %31 = vector.broadcast %30 : vector<1x16xf32> to vector<8x16xf32>
      %c0_17 = arith.constant 0 : index
      %c0_18 = arith.constant 0 : index
      %32 = vector.load %arg8[%c0_17, %c0_18] : memref<8x16xf32, #tpu.memory_space<vmem>>, vector<8x16xf32>
      tpu.vector_store %arg8[%c0_17, %c0_18], %31 {strides = array<i32>} : memref<8x16xf32, #tpu.memory_space<vmem>>, vector<8x16xf32>,
    } else {
    }
    %c0 = arith.constant 0 : index
    %c0_1 = arith.constant 0 : index
    %3 = vector.load %arg5[%c0, %c0_1] : memref<16x32xf32, #tpu.memory_space<vmem>>, vector<16x32xf32>
    %cst = arith.constant 0.000000e+00 : f32
    %4 = vector.broadcast %cst : f32 to vector<16x32xf32>
    %5 = arith.maximumf %3, %4 : vector<16x32xf32>
    %6 = vector.broadcast %cst : f32 to vector<16x32xf32>
    %7 = arith.subf %3, %6 : vector<16x32xf32>
    %8 = arith.cmpf one, %7, %7 : vector<16x32xf32>
    %9 = vector.broadcast %cst : f32 to vector<16x32xf32>
    %10 = arith.addf %3, %9 : vector<16x32xf32>
    %11 = math.absf %7 : vector<16x32xf32>
    %cst_2 = arith.constant 0.000000e+00 : f32
    %12 = vector.broadcast %cst_2 : f32 to vector<16x32xf32>
    %13 = arith.subf %12, %11 : vector<16x32xf32>
    %14 = math.exp %13 : vector<16x32xf32>
    %15 = math.log1p %14 : vector<16x32xf32>
    %16 = arith.addf %5, %15 : vector<16x32xf32>
    %17 = arith.select %8, %10, %16 : vector<16x32xi1>, vector<16x32xf32>
    %cst_3 = arith.constant 9.99999974E-6 : f32
    %18 = vector.broadcast %cst_3 : f32 to vector<16x32xf32>
    %19 = arith.addf %17, %18 : vector<16x32xf32>
    %c0_4 = arith.constant 0 : index
    %c0_5 = arith.constant 0 : index
    %20 = vector.load %arg4[%c0_4, %c0_5] : memref<16x32xf32, #tpu.memory_space<vmem>>, vector<16x32xf32>
    %c0_6 = arith.constant 0 : index
    %c0_7 = arith.constant 0 : index
    %21 = vector.load %arg6[%c0_6, %c0_7] : memref<16x32xf32, #tpu.memory_space<vmem>>, vector<16x32xf32>
    %22 = arith.mulf %21, %19 : vector<16x32xf32>
    %23 = arith.addf %20, %22 : vector<16x32xf32>
    %c0_8 = arith.constant 0 : index
    %c0_9 = arith.constant 0 : index
    %24 = vector.load %arg8[%c0_8, %c0_9] : memref<8x16xf32, #tpu.memory_space<vmem>>, vector<8x16xf32>
    %c0_10 = arith.constant 0 : index
    %c0_11 = arith.constant 0 : index
    %25 = vector.load %arg3[%c0_10, %c0_11] : memref<8x32xf32, #tpu.memory_space<vmem>>, vector<8x32xf32>
    %cst_12 = arith.constant dense<0.000000e+00> : vector<8x16xf32>
    %26 = tpu.matmul %25, %23, %cst_12 {dimension_numbers = #tpu.dot_dimension_numbers<[1], [1], [0], [0], [0, 0, 1, 0], [], []>} : vector<8x32xf32>, vector<16x32xf32>, vector<8x16xf32> -> vector<8x16xf32>
    %27 = arith.addf %24, %26 : vector<8x16xf32>
    %c0_13 = arith.constant 0 : index
    %c0_14 = arith.constant 0 : index
    %28 = vector.load %arg8[%c0_13, %c0_14] : memref<8x16xf32, #tpu.memory_space<vmem>>, vector<8x16xf32>
    tpu.vector_store %arg8[%c0_13, %c0_14], %27 {strides = array<i32>} : memref<8x16xf32, #tpu.memory_space<vmem>>, vector<8x16xf32>,
    return
  }
  func.func @transform_0(%arg0: i32, %arg1: i32, %arg2: i32) -> (i32, i32) {
    %c0_i32 = arith.constant 0 : i32
    return %arg0, %arg2 : i32, i32
  }
  func.func @transform_1(%arg0: i32, %arg1: i32, %arg2: i32) -> (i32, i32) {
    %c0_i32 = arith.constant 0 : i32
    return %arg1, %arg2 : i32, i32
  }
  func.func @transform_2(%arg0: i32, %arg1: i32, %arg2: i32) -> (i32, i32) {
    %c0_i32 = arith.constant 0 : i32
    return %arg1, %arg2 : i32, i32
  }
  func.func @transform_3(%arg0: i32, %arg1: i32, %arg2: i32) -> (i32, i32) {
    %c0_i32 = arith.constant 0 : i32
    return %arg1, %arg2 : i32, i32
  }
  func.func @transform_4(%arg0: i32, %arg1: i32, %arg2: i32) -> (i32, i32) {
    %c0_i32 = arith.constant 0 : i32
    %c0_i32_0 = arith.constant 0 : i32
    return %c0_i32, %arg1 : i32, i32
  }
  func.func @transform_5(%arg0: i32, %arg1: i32, %arg2: i32) -> (i32, i32) {
    %c0_i32 = arith.constant 0 : i32
    return %arg0, %arg1 : i32, i32
  }
}

</mosaic_0001>

<bundles_post_ra>
// kernel: bayes_linear.1
= control target key start
LH: loop header
LB: loop body
LE: loop exit
PB: predicated region body
PF: predicated region fallthrough
CT: control target
= control target key end

     0   :  { %10 = vsyncpa [#allocation3], 0  ;;  %s398_s0 = inlined_call_operand.hbm [shape: f32[8,32], index: 0, kind: input, shape index: {}]   ;;  %s399_s1 = inlined_call_operand.hbm [shape: f32[16,32], index: 1, kind: input, shape index: {}]   ;;  %s400_s2 = inlined_call_operand.hbm [shape: f32[16,32], index: 2, kind: input, shape index: {}]   ;;  %s401_s3 = inlined_call_operand.hbm [shape: f32[16,32], index: 3, kind: input, shape index: {}]   ;;  %s402_s4 = inlined_call_operand.vmem [shape: f32[1,16], index: 4, kind: input, shape index: {}]   ;;  %s403_s5 = inlined_call_operand.hbm [shape: f32[8,16], index: 5, kind: output, shape index: {}]  }
   0x1   :  { %11 = vsyncpa [#allocation6], 0 }
   0x2   :  { %12 = vsyncpa [#allocation9], 0  ;;  %s29_s20 = sshll.u32 %s399_s1, 4  ;;  %s30_s20 = int_to_ptr.hbm [resolvable:$true] %s29_s20 }
   0x3   :  { %13 = vsyncpa [#allocation4], 0  ;;  %s341_s21 = smov [#allocation5]   ;;  %s19_s25 = sshll.u32 %s398_s0, 4  ;;  %s20_s25 = int_to_ptr.hbm [resolvable:$true] %s19_s25 }
   0x4   :  { %s31_s22 = sshll.u32 %s341_s21, 4  ;;  %s342_s26 = smov 128   ;;  %s32_s22 = int_to_ptr.vmem [resolvable:$true] %s31_s22 }
   0x5   :  { %s343_s27 = smov 8   ;;  %s344_s28 = smov [#allocation2]  }
   0x6   :  { %37 = dma.hbm_to_vmem [thread:$0]  %s30_s20, 256, %s32_s22, [#allocation6], %s342_s26, %s342_s26, %s343_s27  }
   0x7   :  { %s21_s29 = sshll.u32 %s344_s28, 4  ;;  %s42_s7 = sshll.u32 %s400_s2, 4  ;;  %s22_s29 = int_to_ptr.vmem [resolvable:$true] %s21_s29  ;;  %s43_s7 = int_to_ptr.hbm [resolvable:$true] %s42_s7 }
   0x8   :  { %24 = dma.hbm_to_vmem [thread:$0]  %s20_s25, 128, %s22_s29, [#allocation3]  }
   0x9   :  { %s55_s9 = sshll.u32 %s401_s3, 4  ;;  %s345_s10 = smov [#allocation7]   ;;  %s56_s9 = int_to_ptr.hbm [resolvable:$true] %s55_s9 }
   0xa   :  { %s44_s11 = sshll.u32 %s345_s10, 4  ;;  %s346_s0 = smov [#allocation8]   ;;  %s45_s11 = int_to_ptr.vmem [resolvable:$true] %s44_s11 }
   0xb   :  { %50 = dma.hbm_to_vmem [thread:$0]  %s43_s7, 256, %s45_s11, [#allocation6], %s342_s26, %s342_s26, %s343_s27  }
   0xc   :  { %s57_s12 = sshll.u32 %s346_s0, 4  ;;  %s58_s12 = int_to_ptr.vmem [resolvable:$true] %s57_s12 }
   0xd   :  { %63 = dma.hbm_to_vmem [thread:$0]  %s56_s9, 256, %s58_s12, [#allocation9], %s342_s26, %s342_s26, %s343_s27  }
   0xe   :  { %333 = dma.done.wait [#allocation3], 128  }
   0xf   :  { %334 = vsyncadd [#allocation3], 4294967168 }
  0x10   :  { %335 = dma.done.wait [#allocation6], 512  }
  0x11   :  { %336 = vsyncadd [#allocation6], 4294966784 }
  0x12   :  { %337 = dma.done.wait [#allocation9], 256  }
  0x13   :  { %338 = vsyncadd [#allocation9], 4294967040  ;;  %v93_v0 = vld [vmem:[#allocation7 + $0x8] sm:$0xff]  ;;  %v92_v2 = vld [vmem:[#allocation7] sm:$0xff]  ;;  %vm90_vm0 = vcmask 130048   ;;  %vm142_vm5 = vcmask 261120  }
  0x14   :  { %v101_v1 = vand.u32 2147483647, %v93_v0  ;;  %v100_v3 = vand.u32 2147483647, %v92_v2  ;;  %v204_v8 = vld [vmem:[%s402_s4] ss:$0 sm:$0xff]  ;;  %vm97_vm3 = vcmp.ne.f32.partialorder %v93_v0, %v93_v0  ;;  %vm96_vm4 = vcmp.ne.f32.partialorder %v92_v2, %v92_v2 }
  0x15   :  { %91 = vst.msk [vmem:[#allocation10] sm:$0xff] %vm90_vm0, %v204_v8  ;;  %v95_v21 = vmax.f32 %v93_v0, 0.0  ;;  %v94_v25 = vmax.f32 %v92_v2, 0.0  ;;  %v135_v32 = vld [vmem:[#allocation8 + $0x8] sm:$0xff]  ;;  %v134_v35 = vld [vmem:[#allocation8] sm:$0xff]  ;;  %v141_v43 = vld [vmem:[#allocation2] sm:$0xff] }
  0x16   :  { %v103_v4 = vsub.f32 0.0, %v101_v1  ;;  %v102_v5 = vsub.f32 0.0, %v100_v3  ;;  %v133_v36 = vld [vmem:[#allocation5 + $0x8] sm:$0xff]  ;;  %v132_v39 = vld [vmem:[#allocation5] sm:$0xff]  ;;  %s347_s4 = smov [#allocation10]   ;;  %s182_s16 = sshll.u32 %s403_s5, 4  ;;  %s183_s16 = int_to_ptr.hbm [resolvable:$true] %s182_s16 }
  0x17   :  { %s180_s13 = sshll.u32 %s347_s4, 4  ;;  %s181_s13 = int_to_ptr.vmem [resolvable:$true] %s180_s13 }
  0x18   :  { %v106_v6 = vmul.f32 1.442695, %v103_v4  ;;  %v104_v7 = vmul.f32 1.442695, %v102_v5 }
  0x1a   :  { %205 = vpow2.f32 %v106_v6 }
  0x1b   :  { %207 = vpow2.f32 %v104_v7 }
  0x1c   :  { %v140_v44 = vld [vmem:[#allocation10] sm:$0xff] }
  0x20   :  { %v206_v9 = vpop.eup %205 }
  0x21   :  { %v208_v10 = vpop.eup %207  ;;  %v117_v11 = vadd.f32 1.0, %v206_v9  ;;  %v120_v12 = vmul.f32 -0.5, %v206_v9  ;;  %v123_v16 = vand.u32 2147483647, %v206_v9 }
  0x22   :  { %v108_v13 = vadd.f32 1.0, %v208_v10  ;;  %v111_v14 = vmul.f32 -0.5, %v208_v10  ;;  %v114_v18 = vand.u32 2147483647, %v208_v10 }
  0x23   :  { %209 = vlog2.f32 %v117_v11  ;;  %v121_v15 = vadd.f32 1.0, %v120_v12  ;;  %vm124_vm1 = vcmp.lt.f32.partialorder %v123_v16, 0.0004427343 }
  0x24   :  { %211 = vlog2.f32 %v108_v13  ;;  %v112_v17 = vadd.f32 1.0, %v111_v14  ;;  %vm115_vm2 = vcmp.lt.f32.partialorder %v114_v18, 0.0004427343 }
  0x25   :  { %v122_v19 = vmul.f32 %v206_v9, %v121_v15 }
  0x26   :  { %v113_v22 = vmul.f32 %v208_v10, %v112_v17 }
  0x29   :  { %v210_v20 = vpop.eup %209 }
  0x2a   :  { %v212_v23 = vpop.eup %211  ;;  %v119_v24 = vmul.f32 0.6931472, %v210_v20 }
  0x2b   :  { %v110_v26 = vmul.f32 0.6931472, %v212_v23 }
  0x2c   :  { %v125_v27 = vsel %vm124_vm1, %v122_v19, %v119_v24 }
  0x2d   :  { %v127_v28 = vadd.f32 %v125_v27, %v95_v21  ;;  %v116_v29 = vsel %vm115_vm2, %v113_v22, %v110_v26 }
  0x2e   :  { %v126_v30 = vadd.f32 %v116_v29, %v94_v25 }
  0x2f   :  { %v129_v31 = vsel %vm97_vm3, %v93_v0, %v127_v28 }
  0x30   :  { %v131_v33 = vadd.f32 1e-05, %v129_v31  ;;  %v128_v34 = vsel %vm96_vm4, %v92_v2, %v126_v30 }
  0x31   :  { %v130_v37 = vadd.f32 1e-05, %v128_v34 }
  0x32   :  { %v137_v38 = vmul.f32 %v135_v32, %v131_v33 }
  0x33   :  { %v136_v40 = vmul.f32 %v134_v35, %v130_v37 }
  0x34   :  { %v139_v41 = vadd.f32 %v137_v38, %v133_v36 }
  0x35   :  { %v138_v42 = vadd.f32 %v136_v40, %v132_v39 }
  0x36   :  { %194 = vmatpush.xpose.msk.msra.mxu0 %vm142_vm5, %v139_v41 }
  0x3a   :  { %195 = vmatpush.xpose.msk.msra.mxu0 %vm142_vm5, %v138_v42 }
  0x3d   :  { %196 = vmatmul.msk.f32.vlgmr.msra.gmra.mxu0 %vm142_vm5, %v141_v43 }
  0xba   :  { %v169_v45 = vpop.f32.mrf.mxu0 }
  0xbb   :  { %v172_v46 = vadd.f32 %v169_v45, %v140_v44 }
  0xbd   :  { %174 = vst.msk [vmem:[#allocation10] sm:$0xff] %vm90_vm0, %v172_v46 }
  0xbe   :  { %185 = dma.vmem_to_hbm [thread:$0]  %s181_s13, 128, %s183_s16, [#allocation4]  }
  0xbf   :  { %339 = dma.done.wait [#allocation4], 128  }
  0xc0   :  { %340 = vsyncadd [#allocation4], 4294967168 }
  0xc1   :  { %190 = vsyncpa [#allocation3], 1 }
  0xc2   :  { %191 = vsyncpa [#allocation6], 1 }
  0xc3   :  { %192 = vsyncpa [#allocation9], 1 }
  0xc4   :  { %193 = vsyncpa [#allocation4], 1 }

</bundles_post_ra>
